<compile_context>
chip_gen: v5e
topology: v5e:2x2
jax: 0.10.0
libtpu: 0.0.40
codegen_flags: <defaults>
</compile_context>

<pallas_src>
import functools
import math

import jax
import jax.numpy as jnp
from jax.experimental import pallas as pl
from jax.experimental.pallas import tpu as pltpu


def linear_relu_kernel(x_ref, w_ref, b_ref, o_ref):
    # x_ref: (N, K) f32, w_ref: (K, F) f32, b_ref: (1, F) f32, o_ref: (N, F) f32
    # K is tiny (3) -> static unroll of the contraction on the VPU; skip the MXU.
    x = x_ref[...]
    w = w_ref[...]
    b = b_ref[...]
    k = x.shape[1]

    y = x[:, 0:1] * w[0:1, :]                 # (N,1)*(1,F) broadcast FMA
    for kk in range(1, k):                    # static unroll (k == 3)
        y = y + x[:, kk:kk + 1] * w[kk:kk + 1, :]
    y = y + b                                 # bias broadcast over rows
    o_ref[...] = jnp.maximum(y, 0.0)          # relu


def _small_call(x2, w_t, b2):
    # block == full array: arbitrary shapes are fine, no (8,128) constraint.
    n, _ = x2.shape
    f = w_t.shape[1]
    return pl.pallas_call(
        linear_relu_kernel,
        out_shape=jax.ShapeDtypeStruct((n, f), x2.dtype),
        in_specs=[
            pl.BlockSpec(memory_space=pltpu.MemorySpace.VMEM),
            pl.BlockSpec(memory_space=pltpu.MemorySpace.VMEM),
            pl.BlockSpec(memory_space=pltpu.MemorySpace.VMEM),
        ],
        out_specs=pl.BlockSpec(memory_space=pltpu.MemorySpace.VMEM),
    )(x2, w_t, b2)


def _tiled_call(x2, w_t, b2, tile_n):
    # 1-D row grid: double-buffered pipelining, rows sharded across TCs on v7x.
    n, k = x2.shape
    f = w_t.shape[1]
    return pl.pallas_call(
        linear_relu_kernel,
        out_shape=jax.ShapeDtypeStruct((n, f), x2.dtype),
        grid=(pl.cdiv(n, tile_n),),
        in_specs=[
            pl.BlockSpec((tile_n, k), lambda i: (i, 0)),
            pl.BlockSpec((k, f), lambda i: (0, 0)),
            pl.BlockSpec((1, f), lambda i: (0, 0)),
        ],
        out_specs=pl.BlockSpec((tile_n, f), lambda i: (i, 0)),
        compiler_params=pltpu.CompilerParams(
            dimension_semantics=("parallel",)),
    )(x2, w_t, b2)


@functools.partial(jax.jit, static_argnames=("tile_n",))
def linear_relu(x, weight, bias, *, tile_n=512):
    """x: (..., K) f32; weight: (F, K) (PyTorch layout); bias: (F,)."""
    *lead, k = x.shape
    f = weight.shape[0]
    n = math.prod(lead) if lead else 1

    x2 = x.reshape(n, k)
    w_t = weight.T                       # (K, F)
    b2 = bias.reshape(1, f)              # (1, F)

    if n >= 2 * tile_n:                  # static shape decision under jit
        out = _tiled_call(x2, w_t, b2, tile_n)
    else:
        out = _small_call(x2, w_t, b2)
    return out.reshape(*lead, f)


if __name__ == "__main__":
    key = jax.random.PRNGKey(0)
    kx, kw, kb, kx2 = jax.random.split(key, 4)

    in_features, out_features = 3, 5
    # PyTorch Linear default init: U(-1/sqrt(in), 1/sqrt(in))
    bound = 1.0 / (in_features ** 0.5)
    weight = jax.random.uniform(kw, (out_features, in_features),
                                minval=-bound, maxval=bound, dtype=jnp.float32)
    bias = jax.random.uniform(kb, (out_features,),
                              minval=-bound, maxval=bound, dtype=jnp.float32)

    # Input consistent with Linear(3, 5): last dim must be 3.
    x = jax.random.normal(kx, (3, 2, in_features), dtype=jnp.float32)

    out = linear_relu(x, weight, bias)
    out = jax.block_until_ready(out)

    ref = jnp.maximum(jnp.einsum("bmk,fk->bmf", x, weight) + bias, 0.0)
    assert out.shape == (3, 2, out_features)
    assert jnp.allclose(out, ref, atol=1e-5), "small-path mismatch vs reference"

    # Exercise the tiled (row-grid) path as well, including a partial last tile.
    x_big = jax.random.normal(kx2, (1300, in_features), dtype=jnp.float32)
    out_big = jax.block_until_ready(linear_relu(x_big, weight, bias))
    ref_big = jnp.maximum(jnp.einsum("nk,fk->nf", x_big, weight) + bias, 0.0)
    assert out_big.shape == (1300, out_features)
    assert jnp.allclose(out_big, ref_big, atol=1e-5), "tiled-path mismatch vs reference"

    print("KERNEL_OK")
</pallas_src>

<mosaic_0001>
module attributes {stable_mosaic.version = 11 : i64} {
  func.func @linear_relu_kernel(%arg0: memref<6x3xf32, #tpu.memory_space<vmem>>, %arg1: memref<3x5xf32, #tpu.memory_space<vmem>>, %arg2: memref<1x5xf32, #tpu.memory_space<vmem>>, %arg3: memref<6x5xf32, #tpu.memory_space<vmem>>) attributes {dimension_semantics = [], scalar_prefetch = 0 : i64, scratch_operands = 0 : i64, tpu.core_type = #tpu.core_type<tc>} {
    %c0 = arith.constant 0 : index
    %c0_0 = arith.constant 0 : index
    %0 = vector.load %arg0[%c0, %c0_0] : memref<6x3xf32, #tpu.memory_space<vmem>>, vector<6x3xf32>
    %c0_1 = arith.constant 0 : index
    %c0_2 = arith.constant 0 : index
    %1 = vector.load %arg1[%c0_1, %c0_2] : memref<3x5xf32, #tpu.memory_space<vmem>>, vector<3x5xf32>
    %c0_3 = arith.constant 0 : index
    %c0_4 = arith.constant 0 : index
    %2 = vector.load %arg2[%c0_3, %c0_4] : memref<1x5xf32, #tpu.memory_space<vmem>>, vector<1x5xf32>
    %3 = vector.extract_strided_slice %0 {offsets = [0, 0], sizes = [6, 1], strides = [1, 1]} : vector<6x3xf32> to vector<6x1xf32>
    %4 = vector.extract_strided_slice %1 {offsets = [0, 0], sizes = [1, 5], strides = [1, 1]} : vector<3x5xf32> to vector<1x5xf32>
    %5 = vector.broadcast %3 : vector<6x1xf32> to vector<6x5xf32>
    %6 = vector.broadcast %4 : vector<1x5xf32> to vector<6x5xf32>
    %7 = arith.mulf %5, %6 : vector<6x5xf32>
    %8 = vector.extract_strided_slice %0 {offsets = [0, 1], sizes = [6, 1], strides = [1, 1]} : vector<6x3xf32> to vector<6x1xf32>
    %9 = vector.extract_strided_slice %1 {offsets = [1, 0], sizes = [1, 5], strides = [1, 1]} : vector<3x5xf32> to vector<1x5xf32>
    %10 = vector.broadcast %8 : vector<6x1xf32> to vector<6x5xf32>
    %11 = vector.broadcast %9 : vector<1x5xf32> to vector<6x5xf32>
    %12 = arith.mulf %10, %11 : vector<6x5xf32>
    %13 = arith.addf %7, %12 : vector<6x5xf32>
    %14 = vector.extract_strided_slice %0 {offsets = [0, 2], sizes = [6, 1], strides = [1, 1]} : vector<6x3xf32> to vector<6x1xf32>
    %15 = vector.extract_strided_slice %1 {offsets = [2, 0], sizes = [1, 5], strides = [1, 1]} : vector<3x5xf32> to vector<1x5xf32>
    %16 = vector.broadcast %14 : vector<6x1xf32> to vector<6x5xf32>
    %17 = vector.broadcast %15 : vector<1x5xf32> to vector<6x5xf32>
    %18 = arith.mulf %16, %17 : vector<6x5xf32>
    %19 = arith.addf %13, %18 : vector<6x5xf32>
    %20 = vector.broadcast %2 : vector<1x5xf32> to vector<6x5xf32>
    %21 = arith.addf %19, %20 : vector<6x5xf32>
    %cst = arith.constant 0.000000e+00 : f32
    %22 = vector.broadcast %cst : f32 to vector<6x5xf32>
    %23 = arith.maximumf %21, %22 : vector<6x5xf32>
    %c0_5 = arith.constant 0 : index
    %c0_6 = arith.constant 0 : index
    %24 = vector.load %arg3[%c0_5, %c0_6] : memref<6x5xf32, #tpu.memory_space<vmem>>, vector<6x5xf32>
    tpu.vector_store %arg3[%c0_5, %c0_6], %23 {strides = array<i32>} : memref<6x5xf32, #tpu.memory_space<vmem>>, vector<6x5xf32>,
    return
  }
}

</mosaic_0001>

<bundles_post_ra>
// kernel: linear_relu.1
= control target key start
LH: loop header
LB: loop body
LE: loop exit
PB: predicated region body
PF: predicated region fallthrough
CT: control target
= control target key end

     0   :  { %v57_v0 = vmov 0   ;;  %v58_v2 = vmov 2   ;;  %v59_v3 = vmov 1   ;;  %vm43_vm0 = vcmask 37888   ;;  %s92_s0 = inlined_call_operand.vmem [shape: f32[6,3], index: 0, kind: input, shape index: {}]   ;;  %s93_s2 = inlined_call_operand.vmem [shape: f32[1,5], index: 2, kind: input, shape index: {}]   ;;  %s94_s1 = inlined_call_operand.vmem [shape: f32[3,5], index: 1, kind: input, shape index: {}]   ;;  %s95_s3 = inlined_call_operand.vmem [shape: f32[6,5], index: 3, kind: output, shape index: {}]  }
   0x1   :  { %52 = vset.pattern.permute.xlu0 %v57_v0  ;;  %v14_v1 = vld [vmem:[%s92_s0] sm:$0x3f]  ;;  %54 = vset.pattern.permute.xlu1 %v58_v2 }
   0x2   :  { %19 = vperm.xlu0 %52, %v14_v1   ;;  %32 = vperm.xlu1 %54, %v14_v1   ;;  %v15_v5 = vld [vmem:[%s94_s1] sm:$0x7] }
   0x3   :  { %v22_v6 = vperm.slane %v15_v5, 0  ;;  %v28_v7 = vperm.slane %v15_v5, 1  ;;  %v35_v8 = vperm.slane %v15_v5, 2  ;;  %v56_v15 = vld [vmem:[%s93_s2] ss:$0 sm:$0xff] }
   0xa   :  { %53 = vset.pattern.permute.xlu0 %v59_v3 }
   0xb   :  { %25 = vperm.xlu0 %53, %v14_v1  }
  0x13   :  { %55 = vset.pattern.permute.xlu0 %v58_v2 }
  0x74   :  { %v20_v4 = vpop.permute.xlu0 %19  ;;  %v33_v9 = vpop.permute.xlu1 %32 }
  0x75   :  { %v23_v11 = vmul.f32 %v22_v6, %v20_v4  ;;  %v36_v13 = vmul.f32 %v35_v8, %v33_v9 }
  0x7d   :  { %v26_v10 = vpop.permute.xlu0 %25 }
  0x7e   :  { %v29_v12 = vmul.f32 %v28_v7, %v26_v10 }
  0x80   :  { %v30_v14 = vadd.f32 %v29_v12, %v23_v11 }
  0x82   :  { %v37_v16 = vadd.f32 %v36_v13, %v30_v14 }
  0x84   :  { %v41_v17 = vadd.f32 %v56_v15, %v37_v16 }
  0x86   :  { %v42_v18 = vmax.f32 %v41_v17, 0.0 }
  0x88   :  { %44 = vst.msk [vmem:[%s95_s3] sm:$0x3f] %vm43_vm0, %v42_v18 }

</bundles_post_ra>
